<compile_context>
chip_gen: v7x
topology: tpu7x:2x2x1
jax: 0.10.0
libtpu: 0.0.40
codegen_flags: <defaults>
</compile_context>

<pallas_src>
import functools
import math

import numpy as np
import jax
import jax.numpy as jnp
from jax import lax
from jax.experimental import pallas as pl
from jax.experimental.pallas import tpu as pltpu

NEG_FILL = -1.0e30   # stands in for -inf; exp() underflows to exactly 0 in f32


def _round_up(x, m):
    return ((x + m - 1) // m) * m


def _cdiv(a, b):
    return -(-a // b)


def _listnet_kernel(preds_ref, labels_ref, out_ref, *, eps, n_lists):
    # (TB, L) tile; the list dimension is the lane (last) dimension.
    preds = preds_ref[...].astype(jnp.float32)    # upcast supports bf16 inputs
    labels = labels_ref[...].astype(jnp.float32)
    tb, ll = preds.shape

    # log-softmax(preds): one exp pass over the tile + one per-row log.
    p_max = jnp.max(preds, axis=1, keepdims=True)
    p_shift = preds - p_max
    p_denom = jnp.sum(jnp.exp(p_shift), axis=1, keepdims=True)
    log_p_preds = p_shift - jnp.log(p_denom)
    # PyTorch computes log(softmax + eps); this clamp reproduces it everywhere
    # except a ~ln(2) window around p == eps, at the cost of one VPU max.
    if eps > 0.0:
        log_p_preds = jnp.maximum(log_p_preds, jnp.float32(math.log(eps)))

    # softmax(labels): padded lanes hold NEG_FILL -> exp underflows to 0, so
    # no mask stream / jnp.where is required for lane padding.  Exact divide.
    l_max = jnp.max(labels, axis=1, keepdims=True)
    l_exp = jnp.exp(labels - l_max)
    l_denom = jnp.sum(l_exp, axis=1, keepdims=True)
    p_labels = l_exp / l_denom

    # Per-element contribution, with B-padding rows (global row >= n_lists)
    # masked out in-kernel, then reduced to a single scalar partial sum.
    row0 = pl.program_id(0) * tb
    rows = row0 + lax.broadcasted_iota(jnp.int32, (tb, ll), 0)
    contrib = jnp.where(rows < n_lists, p_labels * log_p_preds,
                        jnp.float32(0.0))
    s = -jnp.sum(contrib)

    # One tiny (8, 128) one-hot tile per grid step; wrapper sums everything.
    ri = lax.broadcasted_iota(jnp.int32, (8, 128), 0)
    ci = lax.broadcasted_iota(jnp.int32, (8, 128), 1)
    out_ref[0] = jnp.where((ri == 0) & (ci == 0), s, jnp.float32(0.0))


def listnet_loss_pallas(preds2d, labels2d, n_lists=None, eps=1e-12,
                        block_rows=None):
    """preds2d / labels2d: (B, Lpad) float (f32 or bf16), padding lanes
    pre-filled with NEG_FILL, Lpad a multiple of 128.
    n_lists = number of real rows (trace-time constant)."""
    preds2d = jnp.asarray(preds2d)
    labels2d = jnp.asarray(labels2d)
    B, L = preds2d.shape
    if n_lists is None:
        n_lists = B
    n_lists = int(n_lists)
    if L % 128 != 0:
        raise ValueError("list (lane) dimension must be padded to a multiple of 128")

    if block_rows is None:
        # TB*L <= 2^20 elements keeps the double-buffered input streams plus
        # the kernel's f32 intermediates around 24-32 MiB -> fits the 48 MiB
        # scoped-VMEM limit requested below on v5e/v6e/v7x (64 MiB physical
        # on v7x).  Multiple of 16 satisfies bf16 (16, 128) tiling.
        max_tile_elems = 1 << 20
        tb = max(16, (max_tile_elems // L) // 16 * 16)
        # Keep the single "parallel" grid axis at >=4 steps when B allows so
        # both v7x TensorCores get work and the DMA pipeline overlaps.
        tb_cap = max(16, _round_up(_cdiv(_round_up(B, 16), 4), 16))
        tb = min(tb, tb_cap)
    else:
        tb = int(block_rows)
    if tb <= 0 or tb % 16 != 0:
        raise ValueError("block_rows must be a positive multiple of 16")

    B_pad = _round_up(max(B, 1), tb)
    if B_pad != B:
        fill = jnp.full((B_pad - B, L), NEG_FILL, dtype=preds2d.dtype)
        preds2d = jnp.concatenate([preds2d, fill], axis=0)
        labels2d = jnp.concatenate([labels2d, fill], axis=0)
    G = B_pad // tb

    kern = functools.partial(_listnet_kernel, eps=float(eps), n_lists=n_lists)
    partial_sums = pl.pallas_call(
        kern,
        out_shape=jax.ShapeDtypeStruct((G, 8, 128), jnp.float32),
        grid=(G,),
        in_specs=[
            pl.BlockSpec((tb, L), lambda i: (i, 0)),
            pl.BlockSpec((tb, L), lambda i: (i, 0)),
        ],
        out_specs=pl.BlockSpec((1, 8, 128), lambda i: (i, 0, 0)),
        compiler_params=pltpu.CompilerParams(
            dimension_semantics=("parallel",),
            vmem_limit_bytes=48 * 1024 * 1024),
    )(preds2d, labels2d)

    # Each grid step wrote its masked partial sum into element [i, 0, 0];
    # the rest of the (G, 8, 128) output is zeros -> a tiny full sum is exact.
    return jnp.sum(partial_sums) / jnp.float32(n_lists)


def batch_gather(preds, labels, indexes, dtype=jnp.bfloat16):
    """Group flat preds/labels by query id into padded (B, Lpad) tensors.
    Padding lanes are pre-filled with NEG_FILL (== masked_fill(-inf)), so the
    kernel needs no mask stream.  A bool mask is returned only for the
    pure-JAX reference.  Vectorized sort/scatter — no O(B*N) python loop."""
    # TODO(synk): move this grouping on-device (jnp sort / segment gather) so
    # the padded arrays never round-trip through the host.
    idx = np.asarray(indexes).reshape(-1)
    p = np.asarray(preds, dtype=np.float32).reshape(-1)
    l = np.asarray(labels, dtype=np.float32).reshape(-1)
    n = idx.shape[0]
    groups, inv, counts = np.unique(idx, return_inverse=True,
                                    return_counts=True)
    inv = inv.reshape(-1)
    B = int(groups.shape[0])
    Lpad = _round_up(max(int(counts.max()) if B else 1, 1), 128)

    order = np.argsort(inv, kind="stable")
    starts = np.concatenate([[0], np.cumsum(counts)[:-1]])
    pos_sorted = np.arange(n) - np.repeat(starts, counts)
    cols = np.empty(n, dtype=np.int64)
    cols[order] = pos_sorted
    rows = inv

    preds_g = np.full((B, Lpad), NEG_FILL, dtype=np.float32)
    labels_g = np.full((B, Lpad), NEG_FILL, dtype=np.float32)
    mask_g = np.zeros((B, Lpad), dtype=bool)
    preds_g[rows, cols] = p
    labels_g[rows, cols] = l
    mask_g[rows, cols] = True
    return (jnp.asarray(preds_g, dtype=dtype),
            jnp.asarray(labels_g, dtype=dtype),
            jnp.asarray(mask_g))


def listnet_loss_ref(preds2d, labels2d, mask2d, eps=1e-12):
    """Pure-JAX reference following the PyTorch formula exactly (run on the
    same padded values the kernel sees, upcast to f32)."""
    m = mask2d
    p = jnp.where(m, preds2d.astype(jnp.float32), -jnp.inf)
    l = jnp.where(m, labels2d.astype(jnp.float32), -jnp.inf)
    pp = jax.nn.softmax(p, axis=1)
    pls = jax.nn.softmax(l, axis=1)
    return jnp.mean(-jnp.sum(pls * jnp.log(pp + eps), axis=1))


if __name__ == "__main__":
    # ListNetLoss has no learnable parameters (only eps); nothing to init.
    eps = 1e-12

    # Case 1: 4 queries with variable list lengths (24 items total), bf16.
    key = jax.random.PRNGKey(0)
    kp, kl = jax.random.split(key)
    group_sizes = [5, 8, 3, 8]
    N = sum(group_sizes)
    indexes = np.concatenate([np.full(s, g, dtype=np.int32)
                              for g, s in enumerate(group_sizes)])
    preds = jax.random.normal(kp, (N, 1), dtype=jnp.float32)          # scores
    labels = jax.random.uniform(kl, (N, 1), dtype=jnp.float32) * 4.0  # relevance

    p2d, l2d, m2d = batch_gather(preds, labels, indexes)
    loss = listnet_loss_pallas(p2d, l2d, n_lists=p2d.shape[0], eps=eps)
    jax.block_until_ready(loss)
    ref = listnet_loss_ref(p2d, l2d, m2d, eps=eps)
    assert jnp.allclose(loss, ref, rtol=1e-4, atol=1e-6), (loss, ref)

    # Case 2: 40 queries -> default tiling gives a 3-step grid with B-padding
    # rows that the in-kernel n_lists mask must drop.
    group_sizes2 = [(g % 9) + 1 for g in range(40)]
    N2 = sum(group_sizes2)
    idx2 = np.concatenate([np.full(s, g, dtype=np.int32)
                           for g, s in enumerate(group_sizes2)])
    kp2, kl2 = jax.random.split(jax.random.PRNGKey(1))
    preds2 = jax.random.normal(kp2, (N2, 1), dtype=jnp.float32)
    labels2 = jax.random.uniform(kl2, (N2, 1), dtype=jnp.float32) * 4.0
    p2, l2, m2 = batch_gather(preds2, labels2, idx2)
    loss2 = listnet_loss_pallas(p2, l2, n_lists=p2.shape[0], eps=eps)
    jax.block_until_ready(loss2)
    ref2 = listnet_loss_ref(p2, l2, m2, eps=eps)
    assert jnp.allclose(loss2, ref2, rtol=1e-4, atol=1e-6), (loss2, ref2)

    # Case 3: same data carried in float32 with an explicit block_rows=32
    # (2-step grid, 24 masked B-padding rows) to cover the f32 path.
    p3, l3, m3 = batch_gather(preds2, labels2, idx2, dtype=jnp.float32)
    loss3 = listnet_loss_pallas(p3, l3, n_lists=p3.shape[0], eps=eps,
                                block_rows=32)
    jax.block_until_ready(loss3)
    ref3 = listnet_loss_ref(p3, l3, m3, eps=eps)
    assert jnp.allclose(loss3, ref3, rtol=1e-4, atol=1e-6), (loss3, ref3)

    print("KERNEL_OK")
</pallas_src>

<mosaic_0001>
module attributes {stable_mosaic.version = 11 : i64} {
  func.func @_listnet_kernel(%arg0: i32, %arg1: memref<16x128xbf16, #tpu.memory_space<vmem>>, %arg2: memref<16x128xbf16, #tpu.memory_space<vmem>>, %arg3: memref<1x8x128xf32, #tpu.memory_space<vmem>>) attributes {dimension_semantics = [#tpu.dimension_semantics<parallel>], iteration_bounds = array<i64: 1>, scalar_prefetch = 0 : i64, scratch_operands = 0 : i64, tpu.core_type = #tpu.core_type<tc>, window_params = [{transform_indices = @transform_0, window_bounds = array<i64: 16, 128>}, {transform_indices = @transform_1, window_bounds = array<i64: 16, 128>}, {transform_indices = @transform_2, window_bounds = array<i64: 1, 8, 128>}]} {
    %c0 = arith.constant 0 : index
    %c0_0 = arith.constant 0 : index
    %0 = vector.load %arg1[%c0, %c0_0] : memref<16x128xbf16, #tpu.memory_space<vmem>>, vector<16x128xbf16>
    %1 = arith.extf %0 : vector<16x128xbf16> to vector<16x128xf32>
    %c0_1 = arith.constant 0 : index
    %c0_2 = arith.constant 0 : index
    %2 = vector.load %arg2[%c0_1, %c0_2] : memref<16x128xbf16, #tpu.memory_space<vmem>>, vector<16x128xbf16>
    %3 = arith.extf %2 : vector<16x128xbf16> to vector<16x128xf32>
    %cst = arith.constant dense<0xFF800000> : vector<16xf32>
    %4 = vector.multi_reduction <maximumf>, %1, %cst [1] : vector<16x128xf32> to vector<16xf32>
    %5 = vector.shape_cast %4 : vector<16xf32> to vector<16x1xf32>
    %6 = vector.broadcast %5 : vector<16x1xf32> to vector<16x128xf32>
    %7 = arith.subf %1, %6 : vector<16x128xf32>
    %8 = math.exp %7 : vector<16x128xf32>
    %cst_3 = arith.constant dense<0.000000e+00> : vector<16xf32>
    %9 = vector.multi_reduction <add>, %8, %cst_3 [1] : vector<16x128xf32> to vector<16xf32>
    %10 = vector.shape_cast %9 : vector<16xf32> to vector<16x1xf32>
    %11 = math.log %10 : vector<16x1xf32>
    %12 = vector.broadcast %11 : vector<16x1xf32> to vector<16x128xf32>
    %13 = arith.subf %7, %12 : vector<16x128xf32>
    %cst_4 = arith.constant -27.6310215 : f32
    %14 = vector.broadcast %cst_4 : f32 to vector<16x128xf32>
    %15 = arith.maximumf %13, %14 : vector<16x128xf32>
    %cst_5 = arith.constant dense<0xFF800000> : vector<16xf32>
    %16 = vector.multi_reduction <maximumf>, %3, %cst_5 [1] : vector<16x128xf32> to vector<16xf32>
    %17 = vector.shape_cast %16 : vector<16xf32> to vector<16x1xf32>
    %18 = vector.broadcast %17 : vector<16x1xf32> to vector<16x128xf32>
    %19 = arith.subf %3, %18 : vector<16x128xf32>
    %20 = math.exp %19 : vector<16x128xf32>
    %cst_6 = arith.constant dense<0.000000e+00> : vector<16xf32>
    %21 = vector.multi_reduction <add>, %20, %cst_6 [1] : vector<16x128xf32> to vector<16xf32>
    %22 = vector.shape_cast %21 : vector<16xf32> to vector<16x1xf32>
    %23 = vector.broadcast %22 : vector<16x1xf32> to vector<16x128xf32>
    %24 = arith.divf %20, %23 : vector<16x128xf32>
    %c16_i32 = arith.constant 16 : i32
    %25 = arith.muli %arg0, %c16_i32 : i32
    %26 = tpu.iota {dimensions = array<i32: 0>} : vector<16x128xi32>
    %27 = vector.broadcast %25 : i32 to vector<16x128xi32>
    %28 = arith.addi %27, %26 : vector<16x128xi32>
    %c4_i32 = arith.constant 4 : i32
    %29 = vector.broadcast %c4_i32 : i32 to vector<16x128xi32>
    %30 = arith.cmpi slt, %28, %29 : vector<16x128xi32>
    %31 = arith.mulf %24, %15 : vector<16x128xf32>
    %cst_7 = arith.constant 0.000000e+00 : f32
    %32 = vector.broadcast %cst_7 : f32 to vector<16x128xf32>
    %33 = arith.select %30, %31, %32 : vector<16x128xi1>, vector<16x128xf32>
    %34 = vector.shape_cast %33 : vector<16x128xf32> to vector<1x16x128xf32>
    %cst_8 = arith.constant dense<0.000000e+00> : vector<1xf32>
    %35 = vector.multi_reduction <add>, %34, %cst_8 [1, 2] : vector<1x16x128xf32> to vector<1xf32>
    %36 = vector.shape_cast %35 : vector<1xf32> to vector<1x1x1xf32>
    %37 = vector.extract %36[0, 0, 0] : f32 from vector<1x1x1xf32>
    %cst_9 = arith.constant 0.000000e+00 : f32
    %38 = arith.subf %cst_9, %37 : f32
    %39 = tpu.iota {dimensions = array<i32: 0>} : vector<8x128xi32>
    %40 = tpu.iota {dimensions = array<i32: 1>} : vector<8x128xi32>
    %c0_i32 = arith.constant 0 : i32
    %41 = vector.broadcast %c0_i32 : i32 to vector<8x128xi32>
    %42 = arith.cmpi eq, %39, %41 : vector<8x128xi32>
    %c0_i32_10 = arith.constant 0 : i32
    %43 = vector.broadcast %c0_i32_10 : i32 to vector<8x128xi32>
    %44 = arith.cmpi eq, %40, %43 : vector<8x128xi32>
    %45 = arith.andi %42, %44 : vector<8x128xi1>
    %cst_11 = arith.constant 0.000000e+00 : f32
    %46 = vector.broadcast %38 : f32 to vector<8x128xf32>
    %47 = vector.broadcast %cst_11 : f32 to vector<8x128xf32>
    %48 = arith.select %45, %46, %47 : vector<8x128xi1>, vector<8x128xf32>
    %c0_12 = arith.constant 0 : index
    %c0_13 = arith.constant 0 : index
    %c0_14 = arith.constant 0 : index
    %49 = vector.load %arg3[%c0_12, %c0_13, %c0_14] : memref<1x8x128xf32, #tpu.memory_space<vmem>>, vector<1x8x128xf32>
    %50 = vector.shape_cast %49 : vector<1x8x128xf32> to vector<8x128xf32>
    %51 = vector.shape_cast %48 : vector<8x128xf32> to vector<1x8x128xf32>
    tpu.vector_store %arg3[%c0_12, %c0_13, %c0_14], %51 {strides = array<i32>} : memref<1x8x128xf32, #tpu.memory_space<vmem>>, vector<1x8x128xf32>,
    return
  }
  func.func @transform_0(%arg0: i32) -> (i32, i32) {
    %c0_i32 = arith.constant 0 : i32
    %c0_i32_0 = arith.constant 0 : i32
    return %arg0, %c0_i32 : i32, i32
  }
  func.func @transform_1(%arg0: i32) -> (i32, i32) {
    %c0_i32 = arith.constant 0 : i32
    %c0_i32_0 = arith.constant 0 : i32
    return %arg0, %c0_i32 : i32, i32
  }
  func.func @transform_2(%arg0: i32) -> (i32, i32, i32) {
    %c0_i32 = arith.constant 0 : i32
    %c0_i32_0 = arith.constant 0 : i32
    %c0_i32_1 = arith.constant 0 : i32
    return %arg0, %c0_i32, %c0_i32_0 : i32, i32, i32
  }
}

</mosaic_0001>

<bundles_post_ra>
// kernel: tpu_custom_call.1
= control target key start
LH: loop header
LB: loop body
LE: loop exit
PB: predicated region body
PF: predicated region fallthrough
CT: control target
= control target key end

     0   :  { %7 = vsyncpa [#allocation3], 0  ;;  %s287_s0 = inlined_call_operand.hbm [shape: bf16[16,128], index: 0, kind: input, shape index: {}]   ;;  %s288_s1 = inlined_call_operand.hbm [shape: bf16[16,128], index: 1, kind: input, shape index: {}]   ;;  %s289_s2 = inlined_call_operand.hbm [shape: f32[1,8,128], index: 2, kind: output, shape index: {}]  }
   0x1   :  { %8 = vsyncpa [#allocation6], 0 }
   0x2   :  { %9 = vsyncpa [#allocation4], 0  ;;  %s231_s9 = smov [#allocation2]   ;;  %s159_s13 = scalar_lea.hbm %s287_s0, 128 }
   0x3   :  { %s15_s10 = sshll.u32 %s231_s9, 4  ;;  %p160_p0 = scmp.ne.s32.totalorder %s287_s0, %s159_s13  ;;  %s16_s10 = int_to_ptr.vmem [resolvable:$true] %s15_s10 }
   0x4   :  { %p163_p1 = scmp.lt.u32.totalorder %s159_s13, %s287_s0 }
   0x6   :  { %p165_p2 = pnand %p163_p1, %p160_p0 }
   0x8   :  { %168 = shalt.err (!%p165_p2)
}
   0x9   :  { %s169_s18 = scalar_lea.vmem %s16_s10, 128  ;;  %p174_p4 = scmp.lt.s32.totalorder %s16_s10, %s16_s10 }
   0xa   :  { %p170_p3 = scmp.ne.s32.totalorder %s16_s10, %s169_s18  ;;  %p175_p5 = scmp.lt.s32.totalorder %s169_s18, %s169_s18 }
   0xc   :  { %p176_p6 = por %p175_p5, %p174_p4 }
   0xe   :  { %p177_p7 = pnand %p176_p6, %p170_p3 }
  0x10   :  { %180 = shalt.err (!%p177_p7)
}
  0x11   :  { %s232_s19 = smov 64   ;;  %s233_s20 = smov 4  }
  0x12   :  { %21 = dma.hbm_to_vmem [thread:$0]  %s287_s0, 128, %s16_s10, [#allocation3], %s232_s19, %s232_s19, %s233_s20  }
  0x13   :  { %s234_s23 = smov [#allocation5]   ;;  %s181_s27 = scalar_lea.hbm %s288_s1, 128 }
  0x14   :  { %s27_s24 = sshll.u32 %s234_s23, 4  ;;  %p182_p8 = scmp.ne.s32.totalorder %s288_s1, %s181_s27  ;;  %s28_s24 = int_to_ptr.vmem [resolvable:$true] %s27_s24 }
  0x15   :  { %p185_p9 = scmp.lt.u32.totalorder %s181_s27, %s288_s1 }
  0x17   :  { %p187_p10 = pnand %p185_p9, %p182_p8 }
  0x19   :  { %190 = shalt.err (!%p187_p10)
}
  0x1a   :  { %s191_s4 = scalar_lea.vmem %s28_s24, 128  ;;  %p196_p12 = scmp.lt.s32.totalorder %s28_s24, %s28_s24 }
  0x1b   :  { %p192_p11 = scmp.ne.s32.totalorder %s28_s24, %s191_s4  ;;  %p197_p13 = scmp.lt.s32.totalorder %s191_s4, %s191_s4 }
  0x1d   :  { %p198_p0 = por %p197_p13, %p196_p12 }
  0x1f   :  { %p199_p1 = pnand %p198_p0, %p192_p11 }
  0x21   :  { %202 = shalt.err (!%p199_p1)
}
  0x22   :  { %33 = dma.hbm_to_vmem [thread:$0]  %s288_s1, 128, %s28_s24, [#allocation6], %s232_s19, %s232_s19, %s233_s20  }
  0x23   :  { %225 = dma.done.wait [#allocation3], 128  }
  0x24   :  { %226 = vsyncadd [#allocation3], 4294967168 }
  0x25   :  { %227 = dma.done.wait [#allocation6], 128  }
  0x26   :  { %228 = vsyncadd [#allocation6], 4294967168  ;;  %v137_v0 = vld [vmem:[#allocation2] sm:$0xf]   ;;  %v141_v1 = vld [vmem:[#allocation5] sm:$0xf]   ;;  %v89_v14 = vlaneseq }
  0x27   :  { %v138_v2 = vunpack.c.l.bf16 %v137_v0  ;;  %v142_v3 = vunpack.c.l.bf16 %v141_v1  ;;  %s235_s6 = smov [#allocation7]  }
  0x28   :  { %v90_v17 = vshrl.u32 %v89_v14, 7  ;;  %v113_v31 = vand.u32 127, %v89_v14  ;;  %s126_s7 = sshll.u32 %s235_s6, 4  ;;  %s127_s7 = int_to_ptr.vmem [resolvable:$true] %s126_s7 }
  0x29   :  { %48 = vmax.xlane.f32.xlu0 %v138_v2  ;;  %s203_s9 = scalar_lea.vmem %s127_s7, 128  ;;  %p208_p3 = scmp.lt.s32.totalorder %s127_s7, %s127_s7 }
  0x2a   :  { %vm95_vm0 = vcmp.lt.s32.totalorder %v90_v17, 4  ;;  %vm114_vm1 = vcmp.eq.s32.totalorder %v90_v17, 0  ;;  %vm115_vm2 = vcmp.eq.s32.totalorder %v113_v31, 0  ;;  %p204_p2 = scmp.ne.s32.totalorder %s127_s7, %s203_s9  ;;  %p209_p4 = scmp.lt.s32.totalorder %s203_s9, %s203_s9 }
  0x2b   :  { %vm116_vm3 = vmand %vm114_vm1, %vm115_vm2 }
  0x2c   :  { %p210_p5 = por %p209_p4, %p208_p3 }
  0x2d   :  { %70 = vmax.xlane.f32.xlu0 %v142_v3 }
  0x2e   :  { %p211_p6 = pnand %p210_p5, %p204_p2 }
  0xb6   :  { %v49_v4 = vpop.xlane.xlu0 %48 }
  0xb7   :  { %v52_v5 = vsub.f32 %v138_v2, %v49_v4 }
  0xb9   :  { %v54_v6 = vmul.f32 1.442695, %v52_v5 }
  0xba   :  { %v71_v7 = vpop.xlane.xlu0 %70 }
  0xbb   :  { %v74_v8 = vsub.f32 %v142_v3, %v71_v7  ;;  %151 = vpow2.f32 %v54_v6 }
  0xbd   :  { %v76_v9 = vmul.f32 1.442695, %v74_v8 }
  0xbf   :  { %153 = vpow2.f32 %v76_v9 }
  0xc5   :  { %v152_v10 = vpop.eup %151 }
  0xc6   :  { %58 = vadd.xlane.f32.xlu1 %v152_v10 }
  0xc9   :  { %v154_v11 = vpop.eup %153 }
  0xca   :  { %80 = vadd.xlane.f32.xlu1 %v154_v11 }
 0x153   :  { %v59_v12 = vpop.xlane.xlu1 %58 }
 0x154   :  { %155 = vlog2.f32 %v59_v12 }
 0x157   :  { %v81_v13 = vpop.xlane.xlu1 %80 }
 0x158   :  { %157 = vrcp.f32 %v81_v13 }
 0x15e   :  { %v156_v15 = vpop.eup %155 }
 0x15f   :  { %v63_v16 = vmul.f32 0.6931472, %v156_v15 }
 0x161   :  { %v66_v18 = vsub.f32 %v52_v5, %v63_v16 }
 0x162   :  { %v158_v19 = vpop.eup %157 }
 0x163   :  { %v68_v20 = vmax.f32 %v66_v18, -27.631021  ;;  %v85_v21 = vmul.f32 %v158_v19, %v154_v11 }
 0x165   :  { %v97_v22 = vmul.f32 %v85_v21, %v68_v20 }
 0x167   :  { %v99_v23 = vsel %vm95_vm0, %v97_v22, 0.0 }
 0x168   :  { %102 = vadd.xlane.f32.xlu0 %v99_v23 }
 0x1f5   :  { %v103_v24 = vpop.xlane.xlu0 %102 }
 0x1f6   :  { %v104_v25 = vrot.slane %v103_v24, 4 }
 0x1f8   :  { %v105_v26 = vadd.f32 %v104_v25, %v103_v24 }
 0x1fa   :  { %v106_v27 = vrot.slane %v105_v26, 2 }
 0x1fc   :  { %v107_v28 = vadd.f32 %v106_v27, %v105_v26 }
 0x1fe   :  { %v108_v29 = vrot.slane %v107_v28, 1 }
 0x200   :  { %v109_v30 = vadd.f32 %v108_v29, %v107_v28 }
 0x202   :  { %144 = vpush %v109_v30 }
 0x233   :  { %s145_s1 = spop %144 }
 0x234   :  { %s111_s8 = ssub.f32 0.0, %s145_s1 }
 0x236   :  { %v117_v32 = vstv %s111_s8 }
 0x237   :  { %v118_v33 = vsel %vm116_vm3, %v117_v32, 0.0 }
 0x238   :  { %119 = vst [vmem:[#allocation7] sm:$0xff] %v118_v33 }
 0x239   :  { %214 = shalt.err (!%p211_p6)
}
 0x23a   :  { %s215_s12 = scalar_lea.hbm %s289_s2, 128 }
 0x23b   :  { %p216_p7 = scmp.ne.s32.totalorder %s289_s2, %s215_s12  ;;  %p219_p8 = scmp.lt.u32.totalorder %s215_s12, %s289_s2 }
 0x23d   :  { %p221_p9 = pnand %p219_p8, %p216_p7 }
 0x23f   :  { %224 = shalt.err (!%p221_p9)
}
 0x240   :  { %129 = dma.vmem_to_hbm [thread:$0]  %s127_s7, 128, %s289_s2, [#allocation4]  }
 0x241   :  { %229 = dma.done.wait [#allocation4], 128  }
 0x242   :  { %230 = vsyncadd [#allocation4], 4294967168 }
 0x243   :  { %133 = vsyncpa [#allocation3], 1 }
 0x244   :  { %134 = vsyncpa [#allocation6], 1 }
 0x245   :  { %135 = vsyncpa [#allocation4], 1 }

</bundles_post_ra>
